<compile_context>
chip_gen: v7x
topology: tpu7x:2x2x1
jax: 0.10.0
libtpu: 0.0.40
codegen_flags: <defaults>
</compile_context>

<pallas_src>
import jax
import jax.numpy as jnp
from jax.experimental import pallas as pl
from jax.experimental.pallas import tpu as pltpu

# ----------------------------- model hyperparams -----------------------------
C_IN = 4          # input channels (small, consistent with the module)
H = W = 16        # spatial size
N_CHANNEL = 32    # n_channel (feature width fed to the classifier)
NUM_CLASSES = 10  # CIFAR-10
KSIZE = 3
PAD = 1

LANE = 128                         # TPU lane width
W_PAD = W + 2 * PAD                # 18  (zero-padded width)
K_ROWS = KSIZE * C_IN * W_PAD      # 216 streamed K dim = (dh, c, w_in), NOT lane-padded
N_CONV = N_CHANNEL * W             # 512 conv-output columns = (c_out, w_out), lane-dense
CLS_PAD = LANE                     # 128 padded class dim (lane-dense output block)


# ------------------------------ one-time param prep ---------------------------
def prepare_params(w_conv, b_conv, w_fc, b_fc):
    """One-time packing of PyTorch-layout params into the matrices the kernel consumes.
    Hoisted out of the per-forward hot path (review item).

      wtop : (K_ROWS, N_CONV) bf16, row-Toeplitz conv operator
               wtop[dh*C_IN*W_PAD + c*W_PAD + wi, co*W + wo] = w_conv[co, c, dh, wi-wo]
             (zero unless 0 <= wi-wo < KSIZE), so x_rows @ wtop is the full 3x3/pad=1
             convolution for every (h, w_out) position in one MXU matmul.
      bconv: (1, N_CONV) f32, conv bias replicated over w_out columns.
      pfc  : (N_CONV, CLS_PAD) f32, classifier weight pre-scaled by 1/(H*W) (global
             average pool folded in) and replicated over w_out columns.
      bfc  : (1, CLS_PAD) f32.
    """
    wt = jnp.zeros((KSIZE, C_IN, W_PAD, N_CHANNEL, W), jnp.float32)
    for dw in range(KSIZE):
        w_slice = w_conv[:, :, :, dw].transpose(2, 1, 0)        # (dh, c, c_out)
        for wo in range(W):
            wt = wt.at[:, :, wo + dw, :, wo].set(w_slice)
    wtop = wt.reshape(K_ROWS, N_CONV).astype(jnp.bfloat16)

    bconv = jnp.repeat(b_conv, W)[None, :].astype(jnp.float32)          # (1, 512)

    pfc = jnp.zeros((N_CONV, CLS_PAD), jnp.float32)
    pfc = pfc.at[:, :NUM_CLASSES].set(jnp.repeat(w_fc / float(H * W), W, axis=0))
    bfc = jnp.zeros((1, CLS_PAD), jnp.float32).at[0, :NUM_CLASSES].set(b_fc)
    return wtop, bconv, pfc, bfc


def _choose_block_b(B):
    """Samples per grid step: multiple of 8, capped at 64 (streamed block ~0.4 MiB bf16 +
    ~4-6 MiB of f32 intermediates -> fits v5e's 16 MiB scoped-VMEM default and v7x's
    64 MiB physical VMEM).  For B >= 16 force at least two blocks so the 'parallel' grid
    axis can be sharded across both v7x TensorCores."""
    cap = 64
    if B >= 16:
        half = -(-B // 2)                       # ceil(B / 2)
        blk = min(cap, ((half + 7) // 8) * 8)
    else:
        blk = ((B + 7) // 8) * 8
    return max(8, min(blk, cap))


# ------------------------------ Pallas kernel ---------------------------------
def cifar_kernel(x_ref, wtop_ref, bconv_ref, pfc_ref, bfc_ref, out_ref):
    # x_ref    : (BLOCK_B*H, K_ROWS)  bf16  streamed H-direction patch rows
    # wtop_ref : (K_ROWS, N_CONV)     bf16  resident row-Toeplitz conv weight
    # bconv_ref: (1, N_CONV)          f32   resident conv bias (per (c_out, w_out) column)
    # pfc_ref  : (N_CONV, CLS_PAD)    f32   resident pooled-classifier weight
    # bfc_ref  : (1, CLS_PAD)         f32
    # out_ref  : (BLOCK_B, CLS_PAD)   f32   lane-dense logits block
    block_b = out_ref.shape[0]

    # Full 3x3 conv for every (h, w_out) of the block: one MXU matmul (bf16 in, f32 acc).
    conv = jnp.dot(x_ref[...], wtop_ref[...],
                   preferred_element_type=jnp.float32)             # (BLOCK_B*H, N_CONV)
    act = jnp.maximum(conv + bconv_ref[...], 0.0)                  # bias + ReLU (VPU, f32)

    # Global average pool: sum over h here (cheap sublane reduction); the sum over w_out
    # and the 1/(H*W) scale are folded into pfc, so the classifier is one small matmul.
    act_h = jnp.sum(act.reshape(block_b, H, N_CONV), axis=1)       # (BLOCK_B, N_CONV)
    out_ref[...] = jnp.dot(act_h, pfc_ref[...],
                           preferred_element_type=jnp.float32) + bfc_ref[...]


def cifar_forward(x_nchw, params):
    """x_nchw: (B, C_IN, H, W) float32 -> logits (B, NUM_CLASSES) float32."""
    wtop, bconv, pfc, bfc = params
    B = x_nchw.shape[0]
    block_b = _choose_block_b(B)
    n_blocks = pl.cdiv(B, block_b)
    b_pad = n_blocks * block_b

    # Cheap per-call prep (tiny HBM pass): pad batch + spatial, then H-direction patch
    # rows only.  The W-direction taps live in the Toeplitz weight, so the streamed slab
    # is KSIZE*C_IN*W_PAD = 216 bf16 values per output row (~6.8 KiB/sample) instead of
    # the previous 128 KiB/sample lane-padded full im2col slab.
    xp = jnp.pad(x_nchw, ((0, b_pad - B), (0, 0), (PAD, PAD), (PAD, PAD)))   # (b_pad,C,18,18)
    xr = jnp.stack([xp[:, :, dh:dh + H, :] for dh in range(KSIZE)], axis=1)  # (b_pad,3,C,16,18)
    xr = xr.transpose(0, 3, 1, 2, 4).reshape(b_pad * H, K_ROWS)              # (b_pad*16, 216)
    xr = xr.astype(jnp.bfloat16)

    grid_spec = pl.GridSpec(
        grid=(n_blocks,),
        in_specs=[
            pl.BlockSpec((block_b * H, K_ROWS), lambda i: (i, 0)),   # streamed patch rows
            pl.BlockSpec((K_ROWS, N_CONV), lambda i: (0, 0)),        # resident conv weight
            pl.BlockSpec((1, N_CONV), lambda i: (0, 0)),             # resident conv bias
            pl.BlockSpec((N_CONV, CLS_PAD), lambda i: (0, 0)),       # resident pool+FC weight
            pl.BlockSpec((1, CLS_PAD), lambda i: (0, 0)),            # resident fc bias
        ],
        out_specs=pl.BlockSpec((block_b, CLS_PAD), lambda i: (i, 0)),
    )

    out = pl.pallas_call(
        cifar_kernel,
        out_shape=jax.ShapeDtypeStruct((b_pad, CLS_PAD), jnp.float32),
        grid_spec=grid_spec,
        compiler_params=pltpu.CompilerParams(
            dimension_semantics=("parallel",),
            vmem_limit_bytes=32 * 1024 * 1024),
    )(xr, wtop, bconv, pfc, bfc)

    return out[:B, :NUM_CLASSES]


# ------------------------------ pure-JAX reference -----------------------------
def im2col_nchw(x, ksize=KSIZE, pad=PAD):
    """(B, C, H, W) -> (B, H*W, C*k*k), flatten order (c, kh, kw) matching PyTorch."""
    B, C, Hh, Ww = x.shape
    xp = jnp.pad(x, ((0, 0), (0, 0), (pad, pad), (pad, pad)))
    cols = []
    for dh in range(ksize):
        for dw in range(ksize):
            cols.append(xp[:, :, dh:dh + Hh, dw:dw + Ww])
    p = jnp.stack(cols, axis=2)                                   # (B, C, k*k, H, W)
    p = p.reshape(B, C * ksize * ksize, Hh * Ww)
    return p.transpose(0, 2, 1)                                   # (B, HW, C*k*k)


def cifar_reference(x_nchw, w_conv, b_conv, w_fc, b_fc):
    patches = im2col_nchw(x_nchw)                                 # (B, HW, K)
    wmat = w_conv.reshape(N_CHANNEL, -1).T                        # (K, Cmid)
    conv = jnp.einsum("bpk,kc->bpc", patches, wmat) + b_conv[None, None, :]
    act = jnp.maximum(conv, 0.0)
    pooled = act.mean(axis=1)                                     # (B, Cmid)
    return pooled @ w_fc + b_fc[None, :]


# ----------------------------------- main --------------------------------------
if __name__ == "__main__":
    key = jax.random.PRNGKey(0)
    k_x, k_wc, k_bc, k_wf, k_bf = jax.random.split(key, 5)

    B = 2
    x = jax.random.normal(k_x, (B, C_IN, H, W), dtype=jnp.float32)

    # Deterministic synthetic parameters (PyTorch shape conventions).
    w_conv = 0.1 * jax.random.normal(k_wc, (N_CHANNEL, C_IN, KSIZE, KSIZE), jnp.float32)
    b_conv = 0.1 * jax.random.normal(k_bc, (N_CHANNEL,), jnp.float32)
    w_fc = 0.1 * jax.random.normal(k_wf, (N_CHANNEL, NUM_CLASSES), jnp.float32)
    b_fc = 0.1 * jax.random.normal(k_bf, (NUM_CLASSES,), jnp.float32)

    params = prepare_params(w_conv, b_conv, w_fc, b_fc)   # one-time packing (hot path excluded)

    forward = jax.jit(cifar_forward)
    logits = jax.block_until_ready(forward(x, params))
    ref = jax.block_until_ready(cifar_reference(x, w_conv, b_conv, w_fc, b_fc))

    assert logits.shape == (B, NUM_CLASSES), logits.shape
    # bf16-streamed activations: tolerance loosened vs. the f32 reference (expected
    # precision loss, per review), observed error is ~1e-3 on O(0.1-0.4) logits.
    assert jnp.allclose(logits, ref, rtol=2e-2, atol=2e-2), (logits, ref)

    print("KERNEL_OK")
</pallas_src>

<mosaic_0001>
module attributes {stable_mosaic.version = 11 : i64} {
  func.func @cifar_kernel(%arg0: i32, %arg1: memref<128x216xbf16, #tpu.memory_space<vmem>>, %arg2: memref<216x512xbf16, #tpu.memory_space<vmem>>, %arg3: memref<1x512xf32, #tpu.memory_space<vmem>>, %arg4: memref<512x128xf32, #tpu.memory_space<vmem>>, %arg5: memref<1x128xf32, #tpu.memory_space<vmem>>, %arg6: memref<8x128xf32, #tpu.memory_space<vmem>>) attributes {dimension_semantics = [#tpu.dimension_semantics<parallel>], iteration_bounds = array<i64: 1>, scalar_prefetch = 0 : i64, scratch_operands = 0 : i64, tpu.core_type = #tpu.core_type<tc>, window_params = [{transform_indices = @transform_0, window_bounds = array<i64: 128, 216>}, {pipeline_mode = #tpu.pipeline_mode<synchronous>, transform_indices = @transform_1, window_bounds = array<i64: 216, 512>}, {pipeline_mode = #tpu.pipeline_mode<synchronous>, transform_indices = @transform_2, window_bounds = array<i64: 1, 512>}, {pipeline_mode = #tpu.pipeline_mode<synchronous>, transform_indices = @transform_3, window_bounds = array<i64: 512, 128>}, {pipeline_mode = #tpu.pipeline_mode<synchronous>, transform_indices = @transform_4, window_bounds = array<i64: 1, 128>}, {transform_indices = @transform_5, window_bounds = array<i64: 8, 128>}]} {
    %c0 = arith.constant 0 : index
    %c0_0 = arith.constant 0 : index
    %0 = vector.load %arg1[%c0, %c0_0] : memref<128x216xbf16, #tpu.memory_space<vmem>>, vector<128x216xbf16>
    %c0_1 = arith.constant 0 : index
    %c0_2 = arith.constant 0 : index
    %1 = vector.load %arg2[%c0_1, %c0_2] : memref<216x512xbf16, #tpu.memory_space<vmem>>, vector<216x512xbf16>
    %cst = arith.constant dense<0.000000e+00> : vector<128x512xf32>
    %2 = tpu.matmul %0, %1, %cst {dimension_numbers = #tpu.dot_dimension_numbers<[1], [0], [0], [1], [0, 0, 1, 1], [], []>} : vector<128x216xbf16>, vector<216x512xbf16>, vector<128x512xf32> -> vector<128x512xf32>
    %c0_3 = arith.constant 0 : index
    %c0_4 = arith.constant 0 : index
    %3 = vector.load %arg3[%c0_3, %c0_4] : memref<1x512xf32, #tpu.memory_space<vmem>>, vector<1x512xf32>
    %4 = vector.broadcast %3 : vector<1x512xf32> to vector<128x512xf32>
    %5 = arith.addf %2, %4 : vector<128x512xf32>
    %cst_5 = arith.constant 0.000000e+00 : f32
    %6 = vector.broadcast %cst_5 : f32 to vector<128x512xf32>
    %7 = arith.maximumf %5, %6 : vector<128x512xf32>
    %8 = vector.shape_cast %7 : vector<128x512xf32> to vector<8x16x512xf32>
    %cst_6 = arith.constant dense<0.000000e+00> : vector<8x512xf32>
    %9 = vector.multi_reduction <add>, %8, %cst_6 [1] : vector<8x16x512xf32> to vector<8x512xf32>
    %c0_7 = arith.constant 0 : index
    %c0_8 = arith.constant 0 : index
    %10 = vector.load %arg4[%c0_7, %c0_8] : memref<512x128xf32, #tpu.memory_space<vmem>>, vector<512x128xf32>
    %cst_9 = arith.constant dense<0.000000e+00> : vector<8x128xf32>
    %11 = tpu.matmul %9, %10, %cst_9 {dimension_numbers = #tpu.dot_dimension_numbers<[1], [0], [0], [1], [0, 0, 1, 1], [], []>} : vector<8x512xf32>, vector<512x128xf32>, vector<8x128xf32> -> vector<8x128xf32>
    %c0_10 = arith.constant 0 : index
    %c0_11 = arith.constant 0 : index
    %12 = vector.load %arg5[%c0_10, %c0_11] : memref<1x128xf32, #tpu.memory_space<vmem>>, vector<1x128xf32>
    %13 = vector.broadcast %12 : vector<1x128xf32> to vector<8x128xf32>
    %14 = arith.addf %11, %13 : vector<8x128xf32>
    %c0_12 = arith.constant 0 : index
    %c0_13 = arith.constant 0 : index
    %15 = vector.load %arg6[%c0_12, %c0_13] : memref<8x128xf32, #tpu.memory_space<vmem>>, vector<8x128xf32>
    tpu.vector_store %arg6[%c0_12, %c0_13], %14 {strides = array<i32>} : memref<8x128xf32, #tpu.memory_space<vmem>>, vector<8x128xf32>,
    return
  }
  func.func @transform_0(%arg0: i32) -> (i32, i32) {
    %c0_i32 = arith.constant 0 : i32
    %c0_i32_0 = arith.constant 0 : i32
    return %arg0, %c0_i32 : i32, i32
  }
  func.func @transform_1(%arg0: i32) -> (i32, i32) {
    %c0_i32 = arith.constant 0 : i32
    %c0_i32_0 = arith.constant 0 : i32
    %c0_i32_1 = arith.constant 0 : i32
    return %c0_i32, %c0_i32_0 : i32, i32
  }
  func.func @transform_2(%arg0: i32) -> (i32, i32) {
    %c0_i32 = arith.constant 0 : i32
    %c0_i32_0 = arith.constant 0 : i32
    %c0_i32_1 = arith.constant 0 : i32
    return %c0_i32, %c0_i32_0 : i32, i32
  }
  func.func @transform_3(%arg0: i32) -> (i32, i32) {
    %c0_i32 = arith.constant 0 : i32
    %c0_i32_0 = arith.constant 0 : i32
    %c0_i32_1 = arith.constant 0 : i32
    return %c0_i32, %c0_i32_0 : i32, i32
  }
  func.func @transform_4(%arg0: i32) -> (i32, i32) {
    %c0_i32 = arith.constant 0 : i32
    %c0_i32_0 = arith.constant 0 : i32
    %c0_i32_1 = arith.constant 0 : i32
    return %c0_i32, %c0_i32_0 : i32, i32
  }
  func.func @transform_5(%arg0: i32) -> (i32, i32) {
    %c0_i32 = arith.constant 0 : i32
    %c0_i32_0 = arith.constant 0 : i32
    return %arg0, %c0_i32 : i32, i32
  }
}

</mosaic_0001>

<bundles_post_ra>
// kernel: cifar_forward.1
= control target key start
LH: loop header
LB: loop body
LE: loop exit
PB: predicated region body
PF: predicated region fallthrough
CT: control target
= control target key end

     0   :  { %vm455_vm0 = vcmask 719872   ;;  %vm480_vm1 = vcmask 1043456   ;;  %vm1110_vm2 = vcmask 1041409   ;;  %vm1112_vm3 = vcmask 1042434   ;;  %s2319_s1 = inlined_call_operand.vmem [shape: bf16[216,512], index: 1, kind: input, shape index: {}]   ;;  %s2320_s0 = inlined_call_operand.vmem [shape: bf16[128,216], index: 0, kind: input, shape index: {}]   ;;  %s2321_s3 = inlined_call_operand.vmem [shape: f32[512,128], index: 3, kind: input, shape index: {}]   ;;  %s2322_s2 = inlined_call_operand.vmem [shape: f32[1,512], index: 2, kind: input, shape index: {}]   ;;  %s2323_s4 = inlined_call_operand.vmem [shape: f32[1,128], index: 4, kind: input, shape index: {}]   ;;  %s2324_s5 = inlined_call_operand.vmem [shape: f32[8,128], index: 5, kind: output, shape index: {}]  }
   0x1   :  { %v1519_v0 = vld [vmem:[%s2319_s1 + $0x4] ss:$16 sps:$4 sm:$0xff]   ;;  %v1521_v1 = vld [vmem:[%s2319_s1 + $0xc] ss:$16 sps:$4 sm:$0xff]   ;;  %v1523_v2 = vld [vmem:[%s2319_s1] ss:$16 sps:$4 sm:$0xff]  }
   0x2   :  { %493 = vmatprep.subr.bf16.mxu0 %v1519_v0  ;;  %v1524_v3 = vld [vmem:[%s2319_s1 + $0x8] ss:$16 sps:$4 sm:$0xff]   ;;  %606 = vmatprep.subr.bf16.mxu1 %v1521_v1  ;;  %v1525_v4 = vld [vmem:[%s2319_s1 + $0x24] ss:$16 sps:$4 sm:$0xff]   ;;  %v1527_v5 = vld [vmem:[%s2319_s1 + $0x2c] ss:$16 sps:$4 sm:$0xff]  }
   0x3   :  { %494 = vmatpush1.bf16.msra.mxu0 %v1523_v2  ;;  %607 = vmatpush1.bf16.msra.mxu1 %v1524_v3  ;;  %v1529_v6 = vld [vmem:[%s2319_s1 + $0x20] ss:$16 sps:$4 sm:$0xff]   ;;  %v1530_v7 = vld [vmem:[%s2319_s1 + $0x28] ss:$16 sps:$4 sm:$0xff]   ;;  %v1531_v8 = vld [vmem:[%s2319_s1 + $0x44] ss:$16 sps:$4 sm:$0xff]  }
   0x4   :  { %495 = vmatprep.subr.bf16.mxu0 %v1525_v4  ;;  %608 = vmatprep.subr.bf16.mxu1 %v1527_v5  ;;  %v1533_v9 = vld [vmem:[%s2319_s1 + $0x4c] ss:$16 sps:$4 sm:$0xff]   ;;  %v1535_v10 = vld [vmem:[%s2319_s1 + $0x40] ss:$16 sps:$4 sm:$0xff]   ;;  %v1536_v11 = vld [vmem:[%s2319_s1 + $0x48] ss:$16 sps:$4 sm:$0xff]  }
   0x5   :  { %v1537_v12 = vld [vmem:[%s2319_s1 + $0x64] ss:$16 sps:$4 sm:$0xff]   ;;  %v1539_v13 = vld [vmem:[%s2319_s1 + $0x6c] ss:$16 sps:$4 sm:$0xff]   ;;  %v1541_v14 = vld [vmem:[%s2319_s1 + $0x60] ss:$16 sps:$4 sm:$0xff]  }
   0x6   :  { %v1542_v15 = vld [vmem:[%s2319_s1 + $0x68] ss:$16 sps:$4 sm:$0xff]   ;;  %v1543_v16 = vld [vmem:[%s2319_s1 + $0x84] ss:$16 sps:$4 sm:$0xff]   ;;  %v1545_v17 = vld [vmem:[%s2319_s1 + $0x8c] ss:$16 sps:$4 sm:$0xff]  }
   0x7   :  { %496 = vmatpush1.bf16.msra.mxu0 %v1529_v6  ;;  %609 = vmatpush1.bf16.msra.mxu1 %v1530_v7  ;;  %v1547_v18 = vld [vmem:[%s2319_s1 + $0x80] ss:$16 sps:$4 sm:$0xff]   ;;  %v1548_v19 = vld [vmem:[%s2319_s1 + $0x88] ss:$16 sps:$4 sm:$0xff]   ;;  %v1549_v20 = vld [vmem:[%s2319_s1 + $0xa4] ss:$16 sps:$4 sm:$0xff]  }
   0x8   :  { %497 = vmatprep.subr.bf16.mxu0 %v1531_v8  ;;  %610 = vmatprep.subr.bf16.mxu1 %v1533_v9  ;;  %v1551_v21 = vld [vmem:[%s2319_s1 + $0xac] ss:$16 sps:$4 sm:$0xff]   ;;  %v1553_v22 = vld [vmem:[%s2319_s1 + $0xa0] ss:$16 sps:$4 sm:$0xff]   ;;  %v1554_v23 = vld [vmem:[%s2319_s1 + $0xa8] ss:$16 sps:$4 sm:$0xff]  }
   0x9   :  { %v1555_v24 = vld [vmem:[%s2319_s1 + $0xc4] ss:$16 sps:$4 sm:$0xff]   ;;  %v1557_v25 = vld [vmem:[%s2319_s1 + $0xcc] ss:$16 sps:$4 sm:$0xff]   ;;  %v1559_v26 = vld [vmem:[%s2319_s1 + $0xc0] ss:$16 sps:$4 sm:$0xff]  }
   0xa   :  { %v1560_v27 = vld [vmem:[%s2319_s1 + $0xc8] ss:$16 sps:$4 sm:$0xff]   ;;  %v1561_v28 = vld [vmem:[%s2319_s1 + $0xe4] ss:$16 sps:$4 sm:$0xff]   ;;  %v1563_v29 = vld [vmem:[%s2319_s1 + $0xec] ss:$16 sps:$4 sm:$0xff]  }
   0xb   :  { %498 = vmatpush1.bf16.msra.mxu0 %v1535_v10  ;;  %611 = vmatpush1.bf16.msra.mxu1 %v1536_v11  ;;  %v1565_v30 = vld [vmem:[%s2319_s1 + $0xe0] ss:$16 sps:$4 sm:$0xff]   ;;  %v1566_v31 = vld [vmem:[%s2319_s1 + $0xe8] ss:$16 sps:$4 sm:$0xff]   ;;  %v1567_v32 = vld [vmem:[%s2319_s1 + $0x104] ss:$16 sps:$4 sm:$0xff]  }
   0xc   :  { %499 = vmatprep.subr.bf16.mxu0 %v1537_v12  ;;  %612 = vmatprep.subr.bf16.mxu1 %v1539_v13  ;;  %v1569_v33 = vld [vmem:[%s2319_s1 + $0x10c] ss:$16 sps:$4 sm:$0xff]   ;;  %v1571_v34 = vld [vmem:[%s2319_s1 + $0x100] ss:$16 sps:$4 sm:$0xff]   ;;  %v1572_v35 = vld [vmem:[%s2319_s1 + $0x108] ss:$16 sps:$4 sm:$0xff]  }
   0xd   :  { %v1573_v36 = vld [vmem:[%s2319_s1 + $0x124] ss:$16 sps:$4 sm:$0xff]   ;;  %v1575_v37 = vld [vmem:[%s2319_s1 + $0x12c] ss:$16 sps:$4 sm:$0xff]   ;;  %v1577_v38 = vld [vmem:[%s2319_s1 + $0x120] ss:$16 sps:$4 sm:$0xff]  }
   0xe   :  { %v1578_v39 = vld [vmem:[%s2319_s1 + $0x128] ss:$16 sps:$4 sm:$0xff]   ;;  %v1603_v40 = vld [vmem:[%s2320_s0 + $0x4] ss:$8 sps:$4 sm:$0xff]   ;;  %v1583_v43 = vld [vmem:[%s2319_s1 + $0x140] ss:$16 sps:$4 sm:$0xff]  }
   0xf   :  { %500 = vmatpush1.bf16.msra.mxu0 %v1541_v14  ;;  %613 = vmatpush1.bf16.msra.mxu1 %v1542_v15  ;;  %v1579_v41 = vld [vmem:[%s2319_s1 + $0x144] ss:$16 sps:$4 sm:$0xff]   ;;  %v1581_v42 = vld [vmem:[%s2319_s1 + $0x14c] ss:$16 sps:$4 sm:$0xff]   ;;  %v1584_v44 = vld [vmem:[%s2319_s1 + $0x148] ss:$16 sps:$4 sm:$0xff]  }
  0x10   :  { %501 = vmatprep.subr.bf16.mxu0 %v1543_v16  ;;  %614 = vmatprep.subr.bf16.mxu1 %v1545_v17  ;;  %v1585_v45 = vld [vmem:[%s2319_s1 + $0x164] ss:$16 sps:$4 sm:$0xff]   ;;  %v1587_v46 = vld [vmem:[%s2319_s1 + $0x16c] ss:$16 sps:$4 sm:$0xff]   ;;  %v1589_v47 = vld [vmem:[%s2319_s1 + $0x160] ss:$16 sps:$4 sm:$0xff]  }
  0x11   :  { %1367 = vmatprep.mubr.msk.bf16.mxu0 %vm455_vm0, %v1603_v40  ;;  %1376 = vmatprep.mubr.msk.bf16.mxu1 %vm455_vm0, %v1603_v40  ;;  %v1590_v48 = vld [vmem:[%s2319_s1 + $0x168] ss:$16 sps:$4 sm:$0xff]   ;;  %v1591_v49 = vld [vmem:[%s2319_s1 + $0x184] ss:$16 sps:$4 sm:$0xff]   ;;  %v1593_v50 = vld [vmem:[%s2319_s1 + $0x18c] ss:$16 sps:$4 sm:$0xff]  }
  0x12   :  { %v89_v51 = vld [vmem:[%s2319_s1 + $0x1a0] sm:$0xff]  ;;  %v90_v52 = vld [vmem:[%s2319_s1 + $0x1a8] sm:$0xff]  ;;  %v1604_v62 = vld [vmem:[%s2320_s0 + $0x14] ss:$8 sps:$4 sm:$0xff]   ;;  %vm1114_vm4 = vcmask 1043459   ;;  %vm1116_vm5 = vcmask 1044484  }
  0x13   :  { %502 = vmatpush1.bf16.msra.mxu0 %v1547_v18  ;;  %615 = vmatpush1.bf16.msra.mxu1 %v1548_v19  ;;  %v1595_v53 = vld [vmem:[%s2319_s1 + $0x180] ss:$16 sps:$4 sm:$0xff]   ;;  %v1596_v54 = vld [vmem:[%s2319_s1 + $0x188] ss:$16 sps:$4 sm:$0xff]   ;;  %v1363_v55 = vcombine.high %v89_v51, %v89_v51  ;;  %v1365_v56 = vcombine.high %v90_v52, %v90_v52  ;;  %v1362_v57 = vcombine.low %v89_v51, %v89_v51  ;;  %v1607_v0 = vld [vmem:[%s2320_s0 + $0x24] ss:$8 sps:$4 sm:$0xff]  }
  0x14   :  { %503 = vmatprep.subr.bf16.mxu0 %v1549_v20  ;;  %616 = vmatprep.subr.bf16.mxu1 %v1551_v21  ;;  %v1364_v58 = vcombine.low %v90_v52, %v90_v52  ;;  %v1601_v61 = vld [vmem:[%s2320_s0] ss:$8 sps:$4 sm:$0xff]   ;;  %v1606_v63 = vld [vmem:[%s2320_s0 + $0x10] ss:$8 sps:$4 sm:$0xff]   ;;  %v1610_v2 = vld [vmem:[%s2320_s0 + $0x34] ss:$8 sps:$4 sm:$0xff]  }
  0x15   :  { %v482_v59 = vsel %vm480_vm1, %v1362_v57, 0  ;;  %v1609_v1 = vld [vmem:[%s2320_s0 + $0x20] ss:$8 sps:$4 sm:$0xff]   ;;  %v1612_v3 = vld [vmem:[%s2320_s0 + $0x30] ss:$8 sps:$4 sm:$0xff]   ;;  %vm1118_vm6 = vcmask 1045509  }
  0x16   :  { %v488_v60 = vsel %vm480_vm1, %v1364_v58, 0  ;;  %v1613_v4 = vld [vmem:[%s2320_s0 + $0x44] ss:$8 sps:$4 sm:$0xff]   ;;  %v1615_v5 = vld [vmem:[%s2320_s0 + $0x40] ss:$8 sps:$4 sm:$0xff]   ;;  %v1014_v52 = vld [vmem:[%s2321_s3 + $0x38] sm:$0xff] }
  0x17   :  { %504 = vmatpush1.bf16.msra.mxu0 %v1553_v22  ;;  %617 = vmatpush1.bf16.msra.mxu1 %v1554_v23  ;;  %v1616_v6 = vld [vmem:[%s2320_s0 + $0x54] ss:$8 sps:$4 sm:$0xff]   ;;  %v1618_v7 = vld [vmem:[%s2320_s0 + $0x50] ss:$8 sps:$4 sm:$0xff]   ;;  %v1619_v8 = vld [vmem:[%s2320_s0 + $0x64] ss:$8 sps:$4 sm:$0xff]  }
  0x18   :  { %505 = vmatprep.subr.bf16.mxu0 %v1555_v24  ;;  %618 = vmatprep.subr.bf16.mxu1 %v1557_v25  ;;  %v1621_v9 = vld [vmem:[%s2320_s0 + $0x60] ss:$8 sps:$4 sm:$0xff]   ;;  %v1622_v10 = vld [vmem:[%s2320_s0 + $0x74] ss:$8 sps:$4 sm:$0xff]   ;;  %v1624_v11 = vld [vmem:[%s2320_s0 + $0x70] ss:$8 sps:$4 sm:$0xff]  }
  0x19   :  { %v1023_v12 = vld [vmem:[%s2321_s3 + $0x80] sm:$0xff]  ;;  %v1024_v13 = vld [vmem:[%s2321_s3 + $0x88] sm:$0xff]  ;;  %v1025_v23 = vld [vmem:[%s2321_s3 + $0x90] sm:$0xff]  ;;  %vm1120_vm7 = vcmask 1046534   ;;  %vm1122_vm8 = vcmask 1047559  }
  0x1a   :  { %v1007_v14 = vld [vmem:[%s2321_s3] sm:$0xff]  ;;  %v1455_v15 = vpack.c.bf16 %v1024_v13, %v1023_v12  ;;  %v1008_v16 = vld [vmem:[%s2321_s3 + $0x8] sm:$0xff]  ;;  %v1026_v25 = vld [vmem:[%s2321_s3 + $0x98] sm:$0xff] }
  0x1b   :  { %506 = vmatpush1.bf16.msra.mxu0 %v1559_v26  ;;  %619 = vmatpush1.bf16.msra.mxu1 %v1560_v27  ;;  %v1055_v17 = vld [vmem:[%s2321_s3 + $0x180] sm:$0xff]  ;;  %v1056_v18 = vld [vmem:[%s2321_s3 + $0x188] sm:$0xff]  ;;  %v1457_v19 = vpack.c.bf16 %v1008_v16, %v1007_v14  ;;  %v1009_v26 = vld [vmem:[%s2321_s3 + $0x10] sm:$0xff] }
  0x1c   :  { %507 = vmatprep.subr.bf16.mxu0 %v1561_v28  ;;  %620 = vmatprep.subr.bf16.mxu1 %v1563_v29  ;;  %v1487_v20 = vpack.c.bf16 %v1056_v18, %v1055_v17  ;;  %v1039_v21 = vld [vmem:[%s2321_s3 + $0x100] sm:$0xff]  ;;  %v1040_v22 = vld [vmem:[%s2321_s3 + $0x108] sm:$0xff]  ;;  %v1010_v27 = vld [vmem:[%s2321_s3 + $0x18] sm:$0xff]  ;;  %v1459_v28 = vpack.c.bf16 %v1026_v25, %v1025_v23 }
  0x1d   :  { %v1489_v24 = vpack.c.bf16 %v1040_v22, %v1039_v21  ;;  %v1461_v29 = vpack.c.bf16 %v1010_v27, %v1009_v26  ;;  %v1045_v57 = vld [vmem:[%s2321_s3 + $0x130] sm:$0xff]  ;;  %v1046_v58 = vld [vmem:[%s2321_s3 + $0x138] sm:$0xff]  ;;  %v1036_v21 = vld [vmem:[%s2321_s3 + $0xe8] sm:$0xff] }
  0x1e   :  { %v1018_v12 = vld [vmem:[%s2321_s3 + $0x58] sm:$0xff]  ;;  %v1065_v13 = vld [vmem:[%s2321_s3 + $0x1d0] sm:$0xff]  ;;  %v1067_v22 = vld [vmem:[%s2321_s3 + $0x1e0] sm:$0xff] }
  0x1f   :  { %508 = vmatpush1.bf16.msra.mxu0 %v1565_v30  ;;  %621 = vmatpush1.bf16.msra.mxu1 %v1566_v31  ;;  %v1057_v30 = vld [vmem:[%s2321_s3 + $0x190] sm:$0xff]  ;;  %v1058_v31 = vld [vmem:[%s2321_s3 + $0x198] sm:$0xff]  ;;  %v1020_v25 = vld [vmem:[%s2321_s3 + $0x68] sm:$0xff] }
  0x20   :  { %509 = vmatprep.subr.bf16.mxu0 %v1567_v32  ;;  %622 = vmatprep.subr.bf16.mxu1 %v1569_v33  ;;  %v1491_v32 = vpack.c.bf16 %v1058_v31, %v1057_v30  ;;  %v1041_v33 = vld [vmem:[%s2321_s3 + $0x110] sm:$0xff]  ;;  %v1050_v18 = vld [vmem:[%s2321_s3 + $0x158] sm:$0xff]  ;;  %v1068_v26 = vld [vmem:[%s2321_s3 + $0x1e8] sm:$0xff] }
  0x21   :  { %v1049_v17 = vld [vmem:[%s2321_s3 + $0x150] sm:$0xff]  ;;  %v1052_v30 = vld [vmem:[%s2321_s3 + $0x168] sm:$0xff] }
  0x23   :  { %510 = vmatpush1.bf16.msra.mxu0 %v1571_v34  ;;  %623 = vmatpush1.bf16.msra.mxu1 %v1572_v35  ;;  %v1042_v34 = vld [vmem:[%s2321_s3 + $0x118] sm:$0xff]  ;;  %v1027_v35 = vld [vmem:[%s2321_s3 + $0xa0] sm:$0xff] }
  0x24   :  { %511 = vmatprep.subr.bf16.mxu0 %v1573_v36  ;;  %624 = vmatprep.subr.bf16.mxu1 %v1575_v37  ;;  %v1493_v36 = vpack.c.bf16 %v1042_v34, %v1041_v33  ;;  %v1028_v37 = vld [vmem:[%s2321_s3 + $0xa8] sm:$0xff]  ;;  %v1038_v33 = vld [vmem:[%s2321_s3 + $0xf8] sm:$0xff]  ;;  %v1069_v34 = vld [vmem:[%s2321_s3 + $0x1f0] sm:$0xff] }
  0x25   :  { %v1463_v40 = vpack.c.bf16 %v1028_v37, %v1027_v35  ;;  %v1022_v37 = vld [vmem:[%s2321_s3 + $0x78] sm:$0xff] }
  0x27   :  { %512 = vmatpush1.bf16.msra.mxu0 %v1577_v38  ;;  %625 = vmatpush1.bf16.msra.mxu1 %v1578_v39  ;;  %v1011_v38 = vld [vmem:[%s2321_s3 + $0x20] sm:$0xff]  ;;  %v1012_v39 = vld [vmem:[%s2321_s3 + $0x28] sm:$0xff] }
  0x28   :  { %513 = vmatprep.subr.bf16.mxu0 %v1579_v41  ;;  %626 = vmatprep.subr.bf16.mxu1 %v1581_v42  ;;  %v1465_v41 = vpack.c.bf16 %v1012_v39, %v1011_v38  ;;  %v1059_v42 = vld [vmem:[%s2321_s3 + $0x1a0] sm:$0xff]  ;;  %v1070_v38 = vld [vmem:[%s2321_s3 + $0x1f8] sm:$0xff] }
  0x2b   :  { %514 = vmatpush1.bf16.msra.mxu0 %v1583_v43  ;;  %627 = vmatpush1.bf16.msra.mxu1 %v1584_v44  ;;  %v1060_v43 = vld [vmem:[%s2321_s3 + $0x1a8] sm:$0xff] }
  0x2c   :  { %515 = vmatprep.subr.bf16.mxu0 %v1585_v45  ;;  %628 = vmatprep.subr.bf16.mxu1 %v1587_v46  ;;  %v1495_v44 = vpack.c.bf16 %v1060_v43, %v1059_v42  ;;  %v1043_v45 = vld [vmem:[%s2321_s3 + $0x120] sm:$0xff]  ;;  %v1044_v46 = vld [vmem:[%s2321_s3 + $0x128] sm:$0xff]  ;;  %v1054_v42 = vld [vmem:[%s2321_s3 + $0x178] sm:$0xff] }
  0x2f   :  { %516 = vmatpush1.bf16.msra.mxu0 %v1589_v47  ;;  %629 = vmatpush1.bf16.msra.mxu1 %v1590_v48  ;;  %v1497_v47 = vpack.c.bf16 %v1044_v46, %v1043_v45  ;;  %v1029_v48 = vld [vmem:[%s2321_s3 + $0xb0] sm:$0xff] }
  0x30   :  { %517 = vmatprep.subr.bf16.mxu0 %v1591_v49  ;;  %630 = vmatprep.subr.bf16.mxu1 %v1593_v50  ;;  %v1030_v49 = vld [vmem:[%s2321_s3 + $0xb8] sm:$0xff]  ;;  %v1013_v50 = vld [vmem:[%s2321_s3 + $0x30] sm:$0xff] }
  0x31   :  { %v1467_v51 = vpack.c.bf16 %v1030_v49, %v1029_v48  ;;  %v91_v48 = vld [vmem:[%s2322_s2] sm:$0xf] }
  0x33   :  { %518 = vmatpush1.bf16.msra.mxu0 %v1595_v53  ;;  %631 = vmatpush1.bf16.msra.mxu1 %v1596_v54  ;;  %v1061_v53 = vld [vmem:[%s2321_s3 + $0x1b0] sm:$0xff]  ;;  %v1062_v54 = vld [vmem:[%s2321_s3 + $0x1b8] sm:$0xff] }
  0x34   :  { %1366 = vmatprep.subr.msk.bf16.mxu0 %vm480_vm1, %v1363_v55  ;;  %1375 = vmatprep.subr.msk.bf16.mxu1 %vm480_vm1, %v1365_v56  ;;  %v1469_v55 = vpack.c.bf16 %v1014_v52, %v1013_v50  ;;  %v1499_v56 = vpack.c.bf16 %v1062_v54, %v1061_v53 }
  0x37   :  { %520 = vmatpush1.bf16.msra.mxu0 %v482_v59  ;;  %633 = vmatpush1.bf16.msra.mxu1 %v488_v60  ;;  %v1501_v59 = vpack.c.bf16 %v1046_v58, %v1045_v57  ;;  %v1031_v60 = vld [vmem:[%s2321_s3 + $0xc0] sm:$0xff] }
  0x38   :  { %1456 = vmatprep.subr.bf16.mxu0 %v1455_v15  ;;  %1488 = vmatprep.subr.bf16.mxu1 %v1487_v20  ;;  %v1066_v15 = vld [vmem:[%s2321_s3 + $0x1d8] sm:$0xff]  ;;  %v1035_v20 = vld [vmem:[%s2321_s3 + $0xe0] sm:$0xff] }
  0x39   :  { %v1507_v16 = vpack.c.bf16 %v1066_v15, %v1065_v13  ;;  %v1479_v23 = vpack.c.bf16 %v1036_v21, %v1035_v20 }
  0x3a   :  { %526 = vmatmul.mubr.bf16.vlgmr.msra.gmra.mrb[0].mxu0 %v1601_v61  ;;  %639 = vmatmul.mubr.bf16.vlgmr.msra.gmra.mrb[0].mxu1 %v1601_v61  ;;  %v1032_v61 = vld [vmem:[%s2321_s3 + $0xc8] sm:$0xff] }
  0x3b   :  { %1368 = vmatprep.mubr.msk.bf16.mxu0 %vm455_vm0, %v1604_v62  ;;  %1377 = vmatprep.mubr.msk.bf16.mxu1 %vm455_vm0, %v1604_v62  ;;  %v1015_v62 = vld [vmem:[%s2321_s3 + $0x40] sm:$0xff] }
  0x3c   :  { %1458 = vmatpush3.bf16.msra.mxu0 %v1457_v19  ;;  %1490 = vmatpush3.bf16.msra.mxu1 %v1489_v24  ;;  %v1509_v19 = vpack.c.bf16 %v1050_v18, %v1049_v17  ;;  %v1019_v24 = vld [vmem:[%s2321_s3 + $0x60] sm:$0xff] }
  0x3d   :  { %1460 = vmatprep.subr.bf16.mxu0 %v1459_v28  ;;  %1492 = vmatprep.subr.bf16.mxu1 %v1491_v32  ;;  %v1481_v27 = vpack.c.bf16 %v1020_v25, %v1019_v24  ;;  %v1511_v28 = vpack.c.bf16 %v1068_v26, %v1067_v22  ;;  %v1037_v32 = vld [vmem:[%s2321_s3 + $0xf0] sm:$0xff] }
  0x3e   :  { %v1483_v35 = vpack.c.bf16 %v1038_v33, %v1037_v32 }
  0x40   :  { %1462 = vmatpush3.bf16.msra.mxu0 %v1461_v29  ;;  %1494 = vmatpush3.bf16.msra.mxu1 %v1493_v36  ;;  %v1051_v29 = vld [vmem:[%s2321_s3 + $0x160] sm:$0xff]  ;;  %v1021_v36 = vld [vmem:[%s2321_s3 + $0x70] sm:$0xff] }
  0x41   :  { %1464 = vmatprep.subr.bf16.mxu0 %v1463_v40  ;;  %1496 = vmatprep.subr.bf16.mxu1 %v1495_v44  ;;  %v1513_v31 = vpack.c.bf16 %v1052_v30, %v1051_v29  ;;  %v1485_v39 = vpack.c.bf16 %v1022_v37, %v1021_v36  ;;  %v1515_v40 = vpack.c.bf16 %v1070_v38, %v1069_v34  ;;  %v93_v44 = vlaneseq }
  0x42   :  { %536 = vmatmul.mubr.bf16.gmra.mrb[4].mxu0 %v1606_v63  ;;  %649 = vmatmul.mubr.bf16.gmra.mrb[4].mxu1 %v1606_v63  ;;  %v1471_v63 = vpack.c.bf16 %v1032_v61, %v1031_v60 }
  0x43   :  { %1369 = vmatprep.mubr.msk.bf16.mxu0 %vm455_vm0, %v1607_v0  ;;  %1378 = vmatprep.mubr.msk.bf16.mxu1 %vm455_vm0, %v1607_v0  ;;  %v1016_v0 = vld [vmem:[%s2321_s3 + $0x48] sm:$0xff]  ;;  %v94_v45 = vshrl.u32 %v93_v44, 7 }
  0x44   :  { %1466 = vmatpush3.bf16.msra.mxu0 %v1465_v41  ;;  %1498 = vmatpush3.bf16.msra.mxu1 %v1497_v47  ;;  %v1053_v41 = vld [vmem:[%s2321_s3 + $0x170] sm:$0xff] }
  0x45   :  { %1468 = vmatprep.subr.bf16.mxu0 %v1467_v51  ;;  %1500 = vmatprep.subr.bf16.mxu1 %v1499_v56  ;;  %v1517_v43 = vpack.c.bf16 %v1054_v42, %v1053_v41  ;;  %v95_v46 = vsub.s32 0, %v94_v45  ;;  %v103_v47 = vsub.s32 2, %v94_v45  ;;  %v99_v49 = vsub.s32 1, %v94_v45 }
  0x46   :  { %v107_v50 = vsub.s32 3, %v94_v45 }
  0x47   :  { %v2076_v51 = vrot.slane %v91_v48, %v95_v46  ;;  %v2078_v52 = vrot.slane %v91_v48, %v103_v47  ;;  %v2080_v53 = vrot.slane %v91_v48, %v99_v49 }
  0x48   :  { %1470 = vmatpush3.bf16.msra.mxu0 %v1469_v55  ;;  %1502 = vmatpush3.bf16.msra.mxu1 %v1501_v59  ;;  %v2082_v54 = vrot.slane %v91_v48, %v107_v50 }
  0x49   :  { %1472 = vmatprep.subr.bf16.mxu0 %v1471_v63 }
  0x4a   :  { %546 = vmatmul.mubr.bf16.gmra.mrb[8].mxu0 %v1609_v1  ;;  %659 = vmatmul.mubr.bf16.gmra.mrb[8].mxu1 %v1609_v1  ;;  %v1063_v1 = vld [vmem:[%s2321_s3 + $0x1c0] sm:$0xff] }
  0x4b   :  { %1370 = vmatprep.mubr.msk.bf16.mxu0 %vm455_vm0, %v1610_v2  ;;  %1379 = vmatprep.mubr.msk.bf16.mxu1 %vm455_vm0, %v1610_v2  ;;  %v1064_v2 = vld [vmem:[%s2321_s3 + $0x1c8] sm:$0xff] }
  0x52   :  { %556 = vmatmul.mubr.bf16.gmra.mrb[12].mxu0 %v1612_v3  ;;  %669 = vmatmul.mubr.bf16.gmra.mrb[12].mxu1 %v1612_v3  ;;  %v1473_v3 = vpack.c.bf16 %v1016_v0, %v1015_v62 }
  0x53   :  { %1371 = vmatprep.mubr.msk.bf16.mxu0 %vm455_vm0, %v1613_v4  ;;  %1380 = vmatprep.mubr.msk.bf16.mxu1 %vm455_vm0, %v1613_v4  ;;  %v1503_v4 = vpack.c.bf16 %v1064_v2, %v1063_v1 }
  0x54   :  { %1474 = vmatpush3.bf16.msra.mxu0 %v1473_v3 }
  0x55   :  { %1504 = vmatprep.subr.bf16.mxu1 %v1503_v4 }
  0x5a   :  { %566 = vmatmul.mubr.bf16.gmra.mrb[16].mxu0 %v1615_v5  ;;  %679 = vmatmul.mubr.bf16.gmra.mrb[16].mxu1 %v1615_v5  ;;  %v1047_v5 = vld [vmem:[%s2321_s3 + $0x140] sm:$0xff] }
  0x5b   :  { %1372 = vmatprep.mubr.msk.bf16.mxu0 %vm455_vm0, %v1616_v6  ;;  %1381 = vmatprep.mubr.msk.bf16.mxu1 %vm455_vm0, %v1616_v6  ;;  %v1048_v6 = vld [vmem:[%s2321_s3 + $0x148] sm:$0xff] }
  0x62   :  { %576 = vmatmul.mubr.bf16.gmra.mrb[20].mxu0 %v1618_v7  ;;  %689 = vmatmul.mubr.bf16.gmra.mrb[20].mxu1 %v1618_v7  ;;  %v1505_v7 = vpack.c.bf16 %v1048_v6, %v1047_v5 }
  0x63   :  { %1373 = vmatprep.mubr.msk.bf16.mxu0 %vm455_vm0, %v1619_v8  ;;  %1382 = vmatprep.mubr.msk.bf16.mxu1 %vm455_vm0, %v1619_v8  ;;  %v1033_v8 = vld [vmem:[%s2321_s3 + $0xd0] sm:$0xff] }
  0x64   :  { %1506 = vmatpush3.bf16.msra.mxu1 %v1505_v7 }
  0x65   :  { %1508 = vmatprep.subr.bf16.mxu1 %v1507_v16 }
  0x68   :  { %1510 = vmatpush3.bf16.msra.mxu1 %v1509_v19 }
  0x69   :  { %1512 = vmatprep.subr.bf16.mxu1 %v1511_v28 }
  0x6a   :  { %586 = vmatmul.mubr.bf16.gmra.mrb[24].mxu0 %v1621_v9  ;;  %699 = vmatmul.mubr.bf16.gmra.mrb[24].mxu1 %v1621_v9  ;;  %v1034_v9 = vld [vmem:[%s2321_s3 + $0xd8] sm:$0xff] }
  0x6b   :  { %1374 = vmatprep.mubr.msk.bf16.mxu0 %vm455_vm0, %v1622_v10  ;;  %1383 = vmatprep.mubr.msk.bf16.mxu1 %vm455_vm0, %v1622_v10  ;;  %v1475_v10 = vpack.c.bf16 %v1034_v9, %v1033_v8 }
  0x6c   :  { %1514 = vmatpush3.bf16.msra.mxu1 %v1513_v31 }
  0x6d   :  { %1476 = vmatprep.subr.bf16.mxu0 %v1475_v10  ;;  %1516 = vmatprep.subr.bf16.mxu1 %v1515_v40 }
  0x70   :  { %1518 = vmatpush3.bf16.msra.mxu1 %v1517_v43 }
  0x72   :  { %596 = vmatmul.mubr.bf16.gmra.mrb[28].mxu0 %v1624_v11  ;;  %709 = vmatmul.mubr.bf16.gmra.mrb[28].mxu1 %v1624_v11  ;;  %v1017_v11 = vld [vmem:[%s2321_s3 + $0x50] sm:$0xff] }
  0x73   :  { %v1477_v14 = vpack.c.bf16 %v1018_v12, %v1017_v11 }
  0x75   :  { %1478 = vmatpush3.bf16.msra.mxu0 %v1477_v14 }
  0x76   :  { %1480 = vmatprep.subr.bf16.mxu0 %v1479_v23 }
  0x79   :  { %1482 = vmatpush3.bf16.msra.mxu0 %v1481_v27 }
  0x7a   :  { %1484 = vmatprep.subr.bf16.mxu0 %v1483_v35 }
  0x7d   :  { %1486 = vmatpush3.bf16.msra.mxu0 %v1485_v39 }
 0x10d   :  { %v527_v55 = vpop.f32.mrb[0].mxu0  ;;  %v640_v56 = vpop.f32.mrb[0].mxu1 }
 0x10e   :  { %v528_v57 = vadd.f32 %v527_v55, %v2076_v51  ;;  %v641_v58 = vadd.f32 %v640_v56, %v2078_v52  ;;  %v529_v59 = vpop.f32.mrb[1].mxu0  ;;  %v642_v60 = vpop.f32.mrb[1].mxu1 }
 0x10f   :  { %v530_v61 = vadd.f32 %v529_v59, %v2080_v53  ;;  %v643_v62 = vadd.f32 %v642_v60, %v2082_v54  ;;  %v531_v63 = vpop.f32.mrb[2].mxu0  ;;  %v644_v0 = vpop.f32.mrb[2].mxu1 }
 0x110   :  { %v721_v1 = vmax.f32 %v641_v58, 0.0  ;;  %v532_v2 = vadd.f32 %v531_v63, %v2076_v51  ;;  %v645_v3 = vadd.f32 %v644_v0, %v2078_v52  ;;  %v533_v4 = vpop.f32.mrb[3].mxu0  ;;  %v646_v5 = vpop.f32.mrb[3].mxu1  ;;  %v719_v9 = vmax.f32 %v528_v57, 0.0 }
 0x111   :  { %v722_v6 = vmax.f32 %v643_v62, 0.0  ;;  %v534_v7 = vadd.f32 %v533_v4, %v2080_v53  ;;  %v647_v8 = vadd.f32 %v646_v5, %v2082_v54  ;;  %v720_v12 = vmax.f32 %v530_v61, 0.0 }
 0x112   :  { %v723_v10 = vmax.f32 %v532_v2, 0.0  ;;  %v725_v11 = vmax.f32 %v645_v3, 0.0 }
 0x113   :  { %v724_v13 = vmax.f32 %v534_v7, 0.0  ;;  %v726_v14 = vmax.f32 %v647_v8, 0.0 }
 0x114   :  { %v783_v15 = vadd.f32 %v723_v10, %v719_v9  ;;  %v797_v16 = vadd.f32 %v725_v11, %v721_v1 }
 0x115   :  { %v790_v17 = vadd.f32 %v724_v13, %v720_v12  ;;  %v804_v18 = vadd.f32 %v726_v14, %v722_v6  ;;  %v537_v19 = vpop.f32.mrb[4].mxu0  ;;  %v650_v20 = vpop.f32.mrb[4].mxu1 }
 0x116   :  { %v784_v21 = vrot.slane %v783_v15, 4  ;;  %v798_v22 = vrot.slane %v797_v16, 4  ;;  %v538_v23 = vadd.f32 %v537_v19, %v2076_v51  ;;  %v651_v24 = vadd.f32 %v650_v20, %v2078_v52  ;;  %v539_v25 = vpop.f32.mrb[5].mxu0  ;;  %v652_v26 = vpop.f32.mrb[5].mxu1 }
 0x117   :  { %v791_v27 = vrot.slane %v790_v17, 4  ;;  %v805_v28 = vrot.slane %v804_v18, 4  ;;  %v540_v29 = vadd.f32 %v539_v25, %v2080_v53  ;;  %v653_v30 = vadd.f32 %v652_v26, %v2082_v54  ;;  %v541_v31 = vpop.f32.mrb[6].mxu0  ;;  %v654_v32 = vpop.f32.mrb[6].mxu1 }
 0x118   :  { %v785_v33 = vadd.f32 %v784_v21, %v783_v15  ;;  %v799_v34 = vadd.f32 %v798_v22, %v797_v16  ;;  %v727_v35 = vmax.f32 %v538_v23, 0.0  ;;  %v729_v36 = vmax.f32 %v651_v24, 0.0  ;;  %v543_v37 = vpop.f32.mrb[7].mxu0  ;;  %v656_v38 = vpop.f32.mrb[7].mxu1 }
 0x119   :  { %v792_v39 = vadd.f32 %v791_v27, %v790_v17  ;;  %v806_v40 = vadd.f32 %v805_v28, %v804_v18  ;;  %v728_v41 = vmax.f32 %v540_v29, 0.0  ;;  %v730_v42 = vmax.f32 %v653_v30, 0.0 }
 0x11a   :  { %v786_v43 = vrot.slane %v785_v33, 2  ;;  %v800_v44 = vrot.slane %v799_v34, 2  ;;  %v542_v45 = vadd.f32 %v541_v31, %v2076_v51  ;;  %v655_v46 = vadd.f32 %v654_v32, %v2078_v52 }
 0x11b   :  { %v793_v47 = vrot.slane %v792_v39, 2  ;;  %v807_v48 = vrot.slane %v806_v40, 2  ;;  %v544_v49 = vadd.f32 %v543_v37, %v2080_v53  ;;  %v657_v50 = vadd.f32 %v656_v38, %v2082_v54 }
 0x11c   :  { %v787_v55 = vadd.f32 %v786_v43, %v785_v33  ;;  %v801_v56 = vadd.f32 %v800_v44, %v799_v34  ;;  %v731_v57 = vmax.f32 %v542_v45, 0.0  ;;  %v733_v58 = vmax.f32 %v655_v46, 0.0 }
 0x11d   :  { %v794_v59 = vadd.f32 %v793_v47, %v792_v39  ;;  %v808_v60 = vadd.f32 %v807_v48, %v806_v40  ;;  %v732_v61 = vmax.f32 %v544_v49, 0.0  ;;  %v734_v62 = vmax.f32 %v657_v50, 0.0  ;;  %v547_v63 = vpop.f32.mrb[8].mxu0  ;;  %v660_v0 = vpop.f32.mrb[8].mxu1 }
 0x11e   :  { %v788_v1 = vrot.slane %v787_v55, 1  ;;  %v802_v2 = vrot.slane %v801_v56, 1  ;;  %v811_v3 = vadd.f32 %v731_v57, %v727_v35  ;;  %v825_v4 = vadd.f32 %v733_v58, %v729_v36  ;;  %v549_v5 = vpop.f32.mrb[9].mxu0  ;;  %v662_v6 = vpop.f32.mrb[9].mxu1 }
 0x11f   :  { %v795_v7 = vrot.slane %v794_v59, 1  ;;  %v809_v8 = vrot.slane %v808_v60, 1  ;;  %v818_v9 = vadd.f32 %v732_v61, %v728_v41  ;;  %v832_v10 = vadd.f32 %v734_v62, %v730_v42  ;;  %v551_v11 = vpop.f32.mrb[10].mxu0  ;;  %v664_v12 = vpop.f32.mrb[10].mxu1 }
 0x120   :  { %v789_v13 = vadd.f32 %v788_v1, %v787_v55  ;;  %v803_v14 = vadd.f32 %v802_v2, %v801_v56  ;;  %v812_v15 = vrot.slane %v811_v3, 4  ;;  %v826_v16 = vrot.slane %v825_v4, 4  ;;  %v553_v17 = vpop.f32.mrb[11].mxu0  ;;  %v666_v18 = vpop.f32.mrb[11].mxu1 }
 0x121   :  { %v796_v19 = vadd.f32 %v795_v7, %v794_v59  ;;  %v810_v20 = vadd.f32 %v809_v8, %v808_v60  ;;  %v819_v21 = vrot.slane %v818_v9, 4  ;;  %v833_v22 = vrot.slane %v832_v10, 4 }
 0x122   :  { %v813_v23 = vadd.f32 %v812_v15, %v811_v3  ;;  %v827_v24 = vadd.f32 %v826_v16, %v825_v4  ;;  %v548_v25 = vadd.f32 %v547_v63, %v2076_v51  ;;  %v661_v26 = vadd.f32 %v660_v0, %v2078_v52 }
 0x123   :  { %v820_v27 = vadd.f32 %v819_v21, %v818_v9  ;;  %v834_v28 = vadd.f32 %v833_v22, %v832_v10  ;;  %v550_v29 = vadd.f32 %v549_v5, %v2080_v53  ;;  %v663_v30 = vadd.f32 %v662_v6, %v2082_v54 }
 0x124   :  { %v814_v31 = vrot.slane %v813_v23, 2  ;;  %v828_v32 = vrot.slane %v827_v24, 2  ;;  %v735_v33 = vmax.f32 %v548_v25, 0.0  ;;  %v737_v34 = vmax.f32 %v661_v26, 0.0 }
 0x125   :  { %v821_v35 = vrot.slane %v820_v27, 2  ;;  %v835_v36 = vrot.slane %v834_v28, 2  ;;  %v736_v37 = vmax.f32 %v550_v29, 0.0  ;;  %v738_v38 = vmax.f32 %v663_v30, 0.0  ;;  %v557_v39 = vpop.f32.mrb[12].mxu0  ;;  %v670_v40 = vpop.f32.mrb[12].mxu1 }
 0x126   :  { %v815_v41 = vadd.f32 %v814_v31, %v813_v23  ;;  %v829_v42 = vadd.f32 %v828_v32, %v827_v24  ;;  %v552_v43 = vadd.f32 %v551_v11, %v2076_v51  ;;  %v665_v44 = vadd.f32 %v664_v12, %v2078_v52  ;;  %v559_v45 = vpop.f32.mrb[13].mxu0  ;;  %v672_v46 = vpop.f32.mrb[13].mxu1 }
 0x127   :  { %v822_v47 = vadd.f32 %v821_v35, %v820_v27  ;;  %v836_v48 = vadd.f32 %v835_v36, %v834_v28  ;;  %v554_v49 = vadd.f32 %v553_v17, %v2080_v53  ;;  %v667_v50 = vadd.f32 %v666_v18, %v2082_v54  ;;  %v561_v55 = vpop.f32.mrb[14].mxu0  ;;  %v674_v56 = vpop.f32.mrb[14].mxu1 }
 0x128   :  { %v816_v57 = vrot.slane %v815_v41, 1  ;;  %v830_v58 = vrot.slane %v829_v42, 1  ;;  %v739_v59 = vmax.f32 %v552_v43, 0.0  ;;  %v741_v60 = vmax.f32 %v665_v44, 0.0  ;;  %v563_v61 = vpop.f32.mrb[15].mxu0  ;;  %v676_v62 = vpop.f32.mrb[15].mxu1 }
 0x129   :  { %v823_v63 = vrot.slane %v822_v47, 1  ;;  %v837_v0 = vrot.slane %v836_v48, 1  ;;  %v740_v1 = vmax.f32 %v554_v49, 0.0  ;;  %v742_v2 = vmax.f32 %v667_v50, 0.0 }
 0x12a   :  { %v817_v3 = vadd.f32 %v816_v57, %v815_v41  ;;  %v831_v4 = vadd.f32 %v830_v58, %v829_v42  ;;  %v839_v5 = vadd.f32 %v739_v59, %v735_v33  ;;  %v853_v6 = vadd.f32 %v741_v60, %v737_v34 }
 0x12b   :  { %v824_v7 = vadd.f32 %v823_v63, %v822_v47  ;;  %v838_v8 = vadd.f32 %v837_v0, %v836_v48  ;;  %v846_v9 = vadd.f32 %v740_v1, %v736_v37  ;;  %v860_v10 = vadd.f32 %v742_v2, %v738_v38 }
 0x12c   :  { %v2109_v11 = vsel %vm1110_vm2, %v817_v3, %v789_v13  ;;  %v2112_v12 = vsel %vm1110_vm2, %v831_v4, %v803_v14  ;;  %v840_v15 = vrot.slane %v839_v5, 4  ;;  %v854_v16 = vrot.slane %v853_v6, 4 }
 0x12d   :  { %v2115_v17 = vsel %vm1110_vm2, %v824_v7, %v796_v19  ;;  %v2118_v18 = vsel %vm1110_vm2, %v838_v8, %v810_v20  ;;  %v847_v21 = vrot.slane %v846_v9, 4  ;;  %v861_v22 = vrot.slane %v860_v10, 4  ;;  %v2120_v23 = vpop.f32.mrb[16].mxu0  ;;  %v2122_v24 = vpop.f32.mrb[16].mxu1 }
 0x12e   :  { %v841_v13 = vadd.f32 %v840_v15, %v839_v5  ;;  %v855_v25 = vadd.f32 %v854_v16, %v853_v6  ;;  %v558_v14 = vadd.f32 %v557_v39, %v2076_v51  ;;  %v671_v26 = vadd.f32 %v670_v40, %v2078_v52  ;;  %v569_v27 = vpop.f32.mrb[17].mxu0  ;;  %v682_v28 = vpop.f32.mrb[17].mxu1 }
 0x12f   :  { %v848_v19 = vadd.f32 %v847_v21, %v846_v9  ;;  %v862_v29 = vadd.f32 %v861_v22, %v860_v10  ;;  %v560_v20 = vadd.f32 %v559_v45, %v2080_v53  ;;  %v673_v30 = vadd.f32 %v672_v46, %v2082_v54  ;;  %v2128_v31 = vpop.f32.mrb[18].mxu0  ;;  %v2130_v32 = vpop.f32.mrb[18].mxu1 }
 0x130   :  { %v842_v33 = vrot.slane %v841_v13, 2  ;;  %v856_v34 = vrot.slane %v855_v25, 2  ;;  %v743_v35 = vmax.f32 %v558_v14, 0.0  ;;  %v745_v36 = vmax.f32 %v671_v26, 0.0  ;;  %v2132_v37 = vpop.f32.mrb[19].mxu0  ;;  %v2134_v38 = vpop.f32.mrb[19].mxu1 }
 0x131   :  { %v849_v39 = vrot.slane %v848_v19, 2  ;;  %v863_v40 = vrot.slane %v862_v29, 2  ;;  %v744_v41 = vmax.f32 %v560_v20, 0.0  ;;  %v746_v42 = vmax.f32 %v673_v30, 0.0 }
 0x132   :  { %v843_v43 = vadd.f32 %v842_v33, %v841_v13  ;;  %v857_v44 = vadd.f32 %v856_v34, %v855_v25  ;;  %v562_v45 = vadd.f32 %v561_v55, %v2076_v51  ;;  %v675_v46 = vadd.f32 %v674_v56, %v2078_v52 }
 0x133   :  { %v850_v47 = vadd.f32 %v849_v39, %v848_v19  ;;  %v864_v48 = vadd.f32 %v863_v40, %v862_v29  ;;  %v564_v49 = vadd.f32 %v563_v61, %v2080_v53  ;;  %v677_v50 = vadd.f32 %v676_v62, %v2082_v54 }
 0x134   :  { %v844_v57 = vrot.slane %v843_v43, 1  ;;  %v858_v58 = vrot.slane %v857_v44, 1  ;;  %v747_v59 = vmax.f32 %v562_v45, 0.0  ;;  %v749_v60 = vmax.f32 %v675_v46, 0.0 }
 0x135   :  { %v851_v63 = vrot.slane %v850_v47, 1  ;;  %v865_v0 = vrot.slane %v864_v48, 1  ;;  %v748_v1 = vmax.f32 %v564_v49, 0.0  ;;  %v750_v2 = vmax.f32 %v677_v50, 0.0  ;;  %v2140_v3 = vpop.f32.mrb[20].mxu0  ;;  %v2142_v4 = vpop.f32.mrb[20].mxu1 }
 0x136   :  { %v845_v55 = vadd.f32 %v844_v57, %v843_v43  ;;  %v859_v56 = vadd.f32 %v858_v58, %v857_v44  ;;  %v867_v5 = vadd.f32 %v747_v59, %v743_v35  ;;  %v881_v6 = vadd.f32 %v749_v60, %v745_v36  ;;  %v2144_v7 = vpop.f32.mrb[21].mxu0  ;;  %v2146_v61 = vpop.f32.mrb[21].mxu1 }
 0x137   :  { %v2148_v62 = vadd.f32 %v851_v63, %v850_v47  ;;  %v2150_v8 = vadd.f32 %v865_v0, %v864_v48  ;;  %v874_v9 = vadd.f32 %v748_v1, %v744_v41  ;;  %v888_v10 = vadd.f32 %v750_v2, %v746_v42  ;;  %v2152_v15 = vpop.f32.mrb[22].mxu0  ;;  %v2154_v16 = vpop.f32.mrb[22].mxu1 }
 0x138   :  { %v1113_v21 = vsel %vm1112_vm3, %v845_v55, %v2109_v11  ;;  %v1132_v22 = vsel %vm1112_vm3, %v859_v56, %v2112_v12  ;;  %v868_v13 = vrot.slane %v867_v5, 4  ;;  %v882_v25 = vrot.slane %v881_v6, 4  ;;  %v2160_v14 = vpop.f32.mrb[23].mxu0  ;;  %v2162_v26 = vpop.f32.mrb[23].mxu1 }
 0x139   :  { %v875_v19 = vrot.slane %v874_v9, 4  ;;  %v889_v29 = vrot.slane %v888_v10, 4  ;;  %v568_v20 = vadd.f32 %v2120_v23, %v2076_v51  ;;  %v681_v30 = vadd.f32 %v2122_v24, %v2078_v52 }
 0x13a   :  { %v869_v33 = vadd.f32 %v868_v13, %v867_v5  ;;  %v883_v11 = vadd.f32 %v882_v25, %v881_v6  ;;  %v570_v34 = vadd.f32 %v569_v27, %v2080_v53  ;;  %v683_v12 = vadd.f32 %v682_v28, %v2082_v54 }
 0x13b   :  { %v876_v35 = vadd.f32 %v875_v19, %v874_v9  ;;  %v890_v36 = vadd.f32 %v889_v29, %v888_v10  ;;  %v751_v39 = vmax.f32 %v568_v20, 0.0  ;;  %v753_v40 = vmax.f32 %v681_v30, 0.0 }
 0x13c   :  { %v870_v41 = vrot.slane %v869_v33, 2  ;;  %v884_v42 = vrot.slane %v883_v11, 2  ;;  %v752_v43 = vmax.f32 %v570_v34, 0.0  ;;  %v754_v44 = vmax.f32 %v683_v12, 0.0 }
 0x13d   :  { %v877_v45 = vrot.slane %v876_v35, 2  ;;  %v891_v46 = vrot.slane %v890_v36, 2  ;;  %v572_v23 = vadd.f32 %v2128_v31, %v2076_v51  ;;  %v685_v24 = vadd.f32 %v2130_v32, %v2078_v52  ;;  %v2174_v47 = vpop.f32.mrb[24].mxu0  ;;  %v2176_v27 = vpop.f32.mrb[24].mxu1 }
 0x13e   :  { %v871_v28 = vadd.f32 %v870_v41, %v869_v33  ;;  %v885_v48 = vadd.f32 %v884_v42, %v883_v11  ;;  %v574_v49 = vadd.f32 %v2132_v37, %v2080_v53  ;;  %v687_v50 = vadd.f32 %v2134_v38, %v2082_v54  ;;  %v2182_v57 = vpop.f32.mrb[25].mxu0  ;;  %v2184_v58 = vpop.f32.mrb[25].mxu1 }
 0x13f   :  { %v878_v31 = vadd.f32 %v877_v45, %v876_v35  ;;  %v892_v59 = vadd.f32 %v891_v46, %v890_v36  ;;  %v755_v60 = vmax.f32 %v572_v23, 0.0  ;;  %v757_v32 = vmax.f32 %v685_v24, 0.0  ;;  %v2186_v63 = vpop.f32.mrb[26].mxu0  ;;  %v2188_v0 = vpop.f32.mrb[26].mxu1 }
 0x140   :  { %v872_v1 = vrot.slane %v871_v28, 1  ;;  %v886_v2 = vrot.slane %v885_v48, 1  ;;  %v756_v55 = vmax.f32 %v574_v49, 0.0  ;;  %v758_v56 = vmax.f32 %v687_v50, 0.0  ;;  %v2190_v37 = vpop.f32.mrb[27].mxu0  ;;  %v2192_v5 = vpop.f32.mrb[27].mxu1 }
 0x141   :  { %v879_v38 = vrot.slane %v878_v31, 1  ;;  %v893_v6 = vrot.slane %v892_v59, 1  ;;  %v895_v9 = vadd.f32 %v755_v60, %v751_v39  ;;  %v909_v10 = vadd.f32 %v757_v32, %v753_v40 }
 0x142   :  { %v873_v13 = vadd.f32 %v872_v1, %v871_v28  ;;  %v887_v25 = vadd.f32 %v886_v2, %v885_v48  ;;  %v902_v19 = vadd.f32 %v756_v55, %v752_v43  ;;  %v916_v29 = vadd.f32 %v758_v56, %v754_v44 }
 0x143   :  { %v2194_v20 = vadd.f32 %v879_v38, %v878_v31  ;;  %v2196_v30 = vadd.f32 %v893_v6, %v892_v59  ;;  %v896_v33 = vrot.slane %v895_v9, 4  ;;  %v910_v11 = vrot.slane %v909_v10, 4 }
 0x144   :  { %v2199_v34 = vsel %vm1114_vm4, %v873_v13, %v1113_v21  ;;  %v2202_v12 = vsel %vm1114_vm4, %v887_v25, %v1132_v22  ;;  %v903_v35 = vrot.slane %v902_v19, 4  ;;  %v917_v36 = vrot.slane %v916_v29, 4 }
 0x145   :  { %v897_v39 = vadd.f32 %v896_v33, %v895_v9  ;;  %v911_v40 = vadd.f32 %v910_v11, %v909_v10  ;;  %v578_v41 = vadd.f32 %v2140_v3, %v2076_v51  ;;  %v691_v42 = vadd.f32 %v2142_v4, %v2078_v52  ;;  %v2208_v43 = vpop.f32.mrb[28].mxu0  ;;  %v2210_v44 = vpop.f32.mrb[28].mxu1 }
 0x146   :  { %v904_v45 = vadd.f32 %v903_v35, %v902_v19  ;;  %v918_v21 = vadd.f32 %v917_v36, %v916_v29  ;;  %v580_v22 = vadd.f32 %v2144_v7, %v2080_v53  ;;  %v693_v46 = vadd.f32 %v2146_v61, %v2082_v54  ;;  %v2216_v23 = vpop.f32.mrb[29].mxu0  ;;  %v2218_v24 = vpop.f32.mrb[29].mxu1 }
 0x147   :  { %v898_v3 = vrot.slane %v897_v39, 2  ;;  %v912_v28 = vrot.slane %v911_v40, 2  ;;  %v759_v48 = vmax.f32 %v578_v41, 0.0  ;;  %v761_v4 = vmax.f32 %v691_v42, 0.0  ;;  %v2220_v49 = vpop.f32.mrb[30].mxu0  ;;  %v2222_v50 = vpop.f32.mrb[30].mxu1 }
 0x148   :  { %v905_v31 = vrot.slane %v904_v45, 2  ;;  %v919_v59 = vrot.slane %v918_v21, 2  ;;  %v760_v60 = vmax.f32 %v580_v22, 0.0  ;;  %v762_v32 = vmax.f32 %v693_v46, 0.0  ;;  %v2224_v7 = vpop.f32.mrb[31].mxu0  ;;  %v2226_v1 = vpop.f32.mrb[31].mxu1 }
 0x149   :  { %v899_v61 = vadd.f32 %v898_v3, %v897_v39  ;;  %v913_v2 = vadd.f32 %v912_v28, %v911_v40  ;;  %v582_v55 = vadd.f32 %v2152_v15, %v2076_v51  ;;  %v695_v56 = vadd.f32 %v2154_v16, %v2078_v52 }
 0x14a   :  { %v906_v38 = vadd.f32 %v905_v31, %v904_v45  ;;  %v920_v6 = vadd.f32 %v919_v59, %v918_v21  ;;  %v584_v9 = vadd.f32 %v2160_v14, %v2080_v53  ;;  %v697_v10 = vadd.f32 %v2162_v26, %v2082_v54 }
 0x14b   :  { %v900_v13 = vrot.slane %v899_v61, 1  ;;  %v914_v25 = vrot.slane %v913_v2, 1  ;;  %v763_v19 = vmax.f32 %v582_v55, 0.0  ;;  %v765_v29 = vmax.f32 %v695_v56, 0.0 }
 0x14c   :  { %v907_v33 = vrot.slane %v906_v38, 1  ;;  %v921_v11 = vrot.slane %v920_v6, 1  ;;  %v764_v35 = vmax.f32 %v584_v9, 0.0  ;;  %v766_v36 = vmax.f32 %v697_v10, 0.0 }
 0x14d   :  { %v2236_v15 = vadd.f32 %v900_v13, %v899_v61  ;;  %v2238_v39 = vadd.f32 %v914_v25, %v913_v2  ;;  %v923_v16 = vadd.f32 %v763_v19, %v759_v48  ;;  %v937_v40 = vadd.f32 %v765_v29, %v761_v4 }
 0x14e   :  { %v2240_v41 = vadd.f32 %v907_v33, %v906_v38  ;;  %v2242_v14 = vadd.f32 %v921_v11, %v920_v6  ;;  %v930_v42 = vadd.f32 %v764_v35, %v760_v60  ;;  %v944_v26 = vadd.f32 %v766_v36, %v762_v32 }
 0x14f   :  { %v924_v45 = vrot.slane %v923_v16, 4  ;;  %v938_v21 = vrot.slane %v937_v40, 4  ;;  %v588_v22 = vadd.f32 %v2174_v47, %v2076_v51  ;;  %v701_v46 = vadd.f32 %v2176_v27, %v2078_v52 }
 0x150   :  { %v931_v3 = vrot.slane %v930_v42, 4  ;;  %v945_v28 = vrot.slane %v944_v26, 4  ;;  %v590_v48 = vadd.f32 %v2182_v57, %v2080_v53  ;;  %v703_v4 = vadd.f32 %v2184_v58, %v2082_v54 }
 0x151   :  { %v925_v31 = vadd.f32 %v924_v45, %v923_v16  ;;  %v939_v59 = vadd.f32 %v938_v21, %v937_v40  ;;  %v767_v60 = vmax.f32 %v588_v22, 0.0  ;;  %v769_v32 = vmax.f32 %v701_v46, 0.0 }
 0x152   :  { %v932_v61 = vadd.f32 %v931_v3, %v930_v42  ;;  %v946_v2 = vadd.f32 %v945_v28, %v944_v26  ;;  %v768_v55 = vmax.f32 %v590_v48, 0.0  ;;  %v770_v56 = vmax.f32 %v703_v4, 0.0 }
 0x153   :  { %v926_v47 = vrot.slane %v925_v31, 2  ;;  %v940_v38 = vrot.slane %v939_v59, 2  ;;  %v592_v27 = vadd.f32 %v2186_v63, %v2076_v51  ;;  %v705_v6 = vadd.f32 %v2188_v0, %v2078_v52 }
 0x154   :  { %v933_v57 = vrot.slane %v932_v61, 2  ;;  %v947_v9 = vrot.slane %v946_v2, 2  ;;  %v594_v58 = vadd.f32 %v2190_v37, %v2080_v53  ;;  %v707_v10 = vadd.f32 %v2192_v5, %v2082_v54 }
 0x155   :  { %v927_v13 = vadd.f32 %v926_v47, %v925_v31  ;;  %v941_v25 = vadd.f32 %v940_v38, %v939_v59  ;;  %v771_v19 = vmax.f32 %v592_v27, 0.0  ;;  %v773_v29 = vmax.f32 %v705_v6, 0.0 }
 0x156   :  { %v934_v33 = vadd.f32 %v933_v57, %v932_v61  ;;  %v948_v11 = vadd.f32 %v947_v9, %v946_v2  ;;  %v772_v35 = vmax.f32 %v594_v58, 0.0  ;;  %v774_v36 = vmax.f32 %v707_v10, 0.0 }
 0x157   :  { %v928_v63 = vrot.slane %v927_v13, 1  ;;  %v942_v16 = vrot.slane %v941_v25, 1  ;;  %v951_v40 = vadd.f32 %v771_v19, %v767_v60  ;;  %v965_v0 = vadd.f32 %v773_v29, %v769_v32 }
 0x158   :  { %v935_v42 = vrot.slane %v934_v33, 1  ;;  %v949_v26 = vrot.slane %v948_v11, 1  ;;  %v958_v45 = vadd.f32 %v772_v35, %v768_v55  ;;  %v972_v21 = vadd.f32 %v774_v36, %v770_v56 }
 0x159   :  { %v2260_v37 = vadd.f32 %v928_v63, %v927_v13  ;;  %v2262_v22 = vadd.f32 %v942_v16, %v941_v25  ;;  %v952_v5 = vrot.slane %v951_v40, 4  ;;  %v966_v46 = vrot.slane %v965_v0, 4 }
 0x15a   :  { %v936_v3 = vadd.f32 %v935_v42, %v934_v33  ;;  %v2264_v28 = vadd.f32 %v949_v26, %v948_v11  ;;  %v959_v48 = vrot.slane %v958_v45, 4  ;;  %v973_v4 = vrot.slane %v972_v21, 4 }
 0x15b   :  { %v953_v31 = vadd.f32 %v952_v5, %v951_v40  ;;  %v967_v59 = vadd.f32 %v966_v46, %v965_v0  ;;  %v598_v60 = vadd.f32 %v2208_v43, %v2076_v51  ;;  %v711_v32 = vadd.f32 %v2210_v44, %v2078_v52 }
 0x15c   :  { %v960_v61 = vadd.f32 %v959_v48, %v958_v45  ;;  %v974_v2 = vadd.f32 %v973_v4, %v972_v21  ;;  %v600_v55 = vadd.f32 %v2216_v23, %v2080_v53  ;;  %v713_v56 = vadd.f32 %v2218_v24, %v2082_v54 }
 0x15d   :  { %v954_v47 = vrot.slane %v953_v31, 2  ;;  %v968_v38 = vrot.slane %v967_v59, 2  ;;  %v775_v27 = vmax.f32 %v598_v60, 0.0  ;;  %v777_v6 = vmax.f32 %v711_v32, 0.0 }
 0x15e   :  { %v961_v57 = vrot.slane %v960_v61, 2  ;;  %v975_v43 = vrot.slane %v974_v2, 2  ;;  %v776_v9 = vmax.f32 %v600_v55, 0.0  ;;  %v778_v58 = vmax.f32 %v713_v56, 0.0 }
 0x15f   :  { %v955_v44 = vadd.f32 %v954_v47, %v953_v31  ;;  %v969_v10 = vadd.f32 %v968_v38, %v967_v59  ;;  %v602_v13 = vadd.f32 %v2220_v49, %v2076_v51  ;;  %v715_v23 = vadd.f32 %v2222_v50, %v2078_v52 }
 0x160   :  { %v962_v25 = vadd.f32 %v961_v57, %v960_v61  ;;  %v976_v24 = vadd.f32 %v975_v43, %v974_v2  ;;  %v604_v19 = vadd.f32 %v2224_v7, %v2080_v53  ;;  %v717_v29 = vadd.f32 %v2226_v1, %v2082_v54 }
 0x161   :  { %v956_v33 = vrot.slane %v955_v44, 1  ;;  %v970_v11 = vrot.slane %v969_v10, 1  ;;  %v779_v35 = vmax.f32 %v602_v13, 0.0  ;;  %v781_v36 = vmax.f32 %v715_v23, 0.0 }
 0x162   :  { %v963_v63 = vrot.slane %v962_v25, 1  ;;  %v977_v16 = vrot.slane %v976_v24, 1  ;;  %v780_v40 = vmax.f32 %v604_v19, 0.0  ;;  %v782_v0 = vmax.f32 %v717_v29, 0.0  ;;  %v1384_v19 = vld [vmem:[%s2323_s4] ss:$0 sm:$0xff] }
 0x163   :  { %v957_v51 = vadd.f32 %v956_v33, %v955_v44  ;;  %v971_v49 = vadd.f32 %v970_v11, %v969_v10  ;;  %v979_v42 = vadd.f32 %v779_v35, %v775_v27  ;;  %v993_v52 = vadd.f32 %v781_v36, %v777_v6 }
 0x164   :  { %v986_v50 = vadd.f32 %v780_v40, %v776_v9  ;;  %v1000_v26 = vadd.f32 %v782_v0, %v778_v58  ;;  %v964_v45 = vadd.f32 %v963_v63, %v962_v25  ;;  %v1125_v53 = vsel %vm1112_vm3, %v2148_v62, %v2115_v17 }
 0x165   :  { %v980_v54 = vrot.slane %v979_v42, 4  ;;  %v994_v7 = vrot.slane %v993_v52, 4  ;;  %v1126_v1 = vsel %vm1114_vm4, %v2194_v20, %v1125_v53  ;;  %v978_v21 = vadd.f32 %v977_v16, %v976_v24 }
 0x166   :  { %v987_v5 = vrot.slane %v986_v50, 4  ;;  %v1001_v46 = vrot.slane %v1000_v26, 4  ;;  %v1127_v48 = vsel %vm1116_vm5, %v2240_v41, %v1126_v1  ;;  %v1139_v4 = vsel %vm1112_vm3, %v2150_v8, %v2118_v18 }
 0x167   :  { %v981_v31 = vadd.f32 %v980_v54, %v979_v42  ;;  %v995_v59 = vadd.f32 %v994_v7, %v993_v52  ;;  %v1128_v60 = vsel %vm1118_vm6, %v936_v3, %v1127_v48  ;;  %v1140_v17 = vsel %vm1114_vm4, %v2196_v30, %v1139_v4 }
 0x168   :  { %v988_v62 = vadd.f32 %v987_v5, %v986_v50  ;;  %v1002_v32 = vadd.f32 %v1001_v46, %v1000_v26  ;;  %v1129_v20 = vsel %vm1120_vm7, %v964_v45, %v1128_v60  ;;  %v1141_v61 = vsel %vm1116_vm5, %v2242_v14, %v1140_v17 }
 0x169   :  { %v982_v2 = vrot.slane %v981_v31, 2  ;;  %v996_v41 = vrot.slane %v995_v59, 2  ;;  %v1142_v55 = vsel %vm1118_vm6, %v2264_v28, %v1141_v61  ;;  %v1117_v18 = vsel %vm1116_vm5, %v2236_v15, %v2199_v34 }
 0x16a   :  { %v989_v8 = vrot.slane %v988_v62, 2  ;;  %v1003_v3 = vrot.slane %v1002_v32, 2  ;;  %v1143_v30 = vsel %vm1120_vm7, %v978_v21, %v1142_v55  ;;  %v1119_v56 = vsel %vm1118_vm6, %v2260_v37, %v1117_v18 }
 0x16b   :  { %v983_v47 = vadd.f32 %v982_v2, %v981_v31  ;;  %v997_v38 = vadd.f32 %v996_v41, %v995_v59  ;;  %v1121_v14 = vsel %vm1120_vm7, %v957_v51, %v1119_v56  ;;  %v1134_v27 = vsel %vm1116_vm5, %v2238_v39, %v2202_v12 }
 0x16c   :  { %v990_v28 = vadd.f32 %v989_v8, %v988_v62  ;;  %v1004_v6 = vadd.f32 %v1003_v3, %v1002_v32  ;;  %v1135_v34 = vsel %vm1118_vm6, %v2262_v22, %v1134_v27 }
 0x16d   :  { %v984_v15 = vrot.slane %v983_v47, 1  ;;  %v998_v57 = vrot.slane %v997_v38, 1  ;;  %v1136_v43 = vsel %vm1120_vm7, %v971_v49, %v1135_v34 }
 0x16e   :  { %v991_v9 = vrot.slane %v990_v28, 1  ;;  %v1005_v37 = vrot.slane %v1004_v6, 1 }
 0x16f   :  { %v985_v58 = vadd.f32 %v984_v15, %v983_v47  ;;  %v999_v44 = vadd.f32 %v998_v57, %v997_v38 }
 0x170   :  { %v992_v10 = vadd.f32 %v991_v9, %v990_v28  ;;  %v1006_v13 = vadd.f32 %v1005_v37, %v1004_v6 }
 0x171   :  { %v1123_v23 = vsel %vm1122_vm8, %v985_v58, %v1121_v14  ;;  %v1137_v25 = vsel %vm1122_vm8, %v999_v44, %v1136_v43 }
 0x172   :  { %v1130_v24 = vsel %vm1122_vm8, %v992_v10, %v1129_v20  ;;  %v1144_v12 = vsel %vm1122_vm8, %v1006_v13, %v1143_v30 }
 0x173   :  { %1213 = vmatprep.mubr.f32.mxu0 %v1130_v24  ;;  %1283 = vmatprep.mubr.f32.mxu1 %v1144_v12 }
 0x174   :  { %1214 = vmatmul.mubr.f32.vlgmr.msra.gmra.mrb[32].mxu0 %v1123_v23  ;;  %1284 = vmatmul.mubr.f32.vlgmr.msra.gmra.mrb[32].mxu1 %v1137_v25 }
 0x247   :  { %v1417_v39 = vpop.f32.mrb[32].mxu0  ;;  %v1452_v22 = vpop.f32.mrb[32].mxu1 }
 0x248   :  { %v1418_v29 = vpop.f32.mrb[33].mxu0  ;;  %v1453_v33 = vpop.f32.mrb[33].mxu1 }
 0x249   :  { %v1419_v11 = vadd.f32 %v1418_v29, %v1417_v39  ;;  %v1454_v35 = vadd.f32 %v1453_v33, %v1452_v22 }
 0x24b   :  { %v1216_v36 = vadd.f32 %v1419_v11, %v1384_v19 }
 0x24d   :  { %v1286_v63 = vadd.f32 %v1454_v35, %v1216_v36 }
 0x24f   :  { %1289 = vst [vmem:[%s2324_s5] sm:$0xff] %v1286_v63 }

</bundles_post_ra>
